<compile_context>
chip_gen: v5e
topology: v5e:2x2
jax: 0.10.0
libtpu: 0.0.40
codegen_flags: <defaults>
</compile_context>

<pallas_src>
import functools

import jax
import jax.numpy as jnp
from jax.experimental import pallas as pl
from jax.experimental.pallas import tpu as pltpu


def _round_up(x: int, m: int) -> int:
    return ((x + m - 1) // m) * m


def _lane_round(n: int) -> int:
    # 128 for small dims (v5e's 128-wide MXU, minimal padding); 256-aligned once
    # the dim is large enough so the v6e/v7x 2x256x256 MXU stays fully fed.
    return 128 if n <= 128 else _round_up(n, 256)


def _sublane_multiple(dtype) -> int:
    # f32 -> 8 rows, bf16 -> 16, int8/fp8 -> 32 (sub-32-bit packs along sublanes).
    return 8 * max(1, 4 // jnp.dtype(dtype).itemsize)


def _dense_kernel(x_ref, wt_ref, b_ref, o_ref, acc_ref):
    # grid = (n_blocks, m_blocks, k_blocks); K innermost (reduction).
    # x_ref: (tm, tk)   wt_ref: (tk, tn)   b_ref: (1, tn)
    # o_ref: (tm, tn)   acc_ref: (tm, tn) f32 scratch, lives across K steps.
    k = pl.program_id(2)

    @pl.when(k == 0)
    def _():
        acc_ref[...] = jnp.zeros_like(acc_ref)

    # W is pre-transposed to (K, N) outside the hot path, so this is a plain
    # MXU matmul -- no in-kernel transpose of the weight tile.
    acc_ref[...] += jnp.dot(
        x_ref[...], wt_ref[...], preferred_element_type=jnp.float32
    )

    @pl.when(k == pl.num_programs(2) - 1)
    def _():
        y = acc_ref[...] + b_ref[...].astype(jnp.float32)
        o_ref[...] = y.astype(o_ref.dtype)


def prepare_dense_params(weight, bias, *, tn=512, tk=1024):
    """One-time weight/bias layout prep (call OUTSIDE the per-step hot path).

    Transposes W from (out, in) to (in, out) and zero-pads K/N up to the tile
    grid, so the jitted forward never pads, transposes or copies the weight.
    Must be called with the same tn/tk that will be passed to dense_forward.
    """
    N, K = weight.shape
    tn = min(tn, _lane_round(N))
    tk = min(tk, _lane_round(K))
    Np = _round_up(N, tn)
    Kp = _round_up(K, tk)
    w_t = jnp.pad(weight.T, ((0, Kp - K), (0, Np - N)))   # (Kp, Np)
    b2d = jnp.pad(bias, (0, Np - N)).reshape(1, Np)        # (1, Np)
    return w_t, b2d


@functools.partial(jax.jit, static_argnames=("out_dim", "tm", "tn", "tk"))
def dense_forward(x, w_t, b2d, *, out_dim, tm=512, tn=512, tk=1024):
    """y = x @ W^T + b, reshaped to (B, out_dim, 1, 1).

    `w_t` / `b2d` come from prepare_dense_params (transposed + padded weight).
    """
    M, K = x.shape
    Kp, Np = w_t.shape
    assert K <= Kp and out_dim <= Np, (K, Kp, out_dim, Np)

    # Clamp tiles to the padded problem size; prepare_dense_params used the
    # same clamp logic, so divisibility is guaranteed.
    tn = min(tn, Np)
    tk = min(tk, Kp)
    assert Np % tn == 0 and Kp % tk == 0, (Np, tn, Kp, tk)

    sub = _sublane_multiple(x.dtype)
    tm = min(tm, _round_up(M, sub))
    Mp = _round_up(M, tm)

    # Only the (small) activation gets padded per call.  K zero-padding is
    # mathematically inert; padded M rows are sliced off below.
    x_p = x if (Mp == M and Kp == K) else jnp.pad(x, ((0, Mp - M), (0, Kp - K)))

    n_blocks, m_blocks, k_blocks = Np // tn, Mp // tm, Kp // tk
    # N outermost: the leading "parallel" axis keeps >= 2 blocks even when the
    # batch collapses to a single M block (megacore sharding on v7x).
    grid = (n_blocks, m_blocks, k_blocks)

    # Deeper buffering on the weight stream when the kernel is weight-bandwidth
    # bound (GEMV-like: single M block) and there is something to pipeline.
    w_spec_args = ((tk, tn), lambda j, i, k: (k, j))
    w_bufs = 2
    if m_blocks == 1 and n_blocks * k_blocks >= 3:
        try:
            w_spec = pl.BlockSpec(*w_spec_args, pipeline_mode=pl.Buffered(3))
            w_bufs = 3
        except TypeError:  # older jax without pipeline_mode kwarg
            w_spec = pl.BlockSpec(*w_spec_args)
    else:
        w_spec = pl.BlockSpec(*w_spec_args)

    itemsize = jnp.dtype(x.dtype).itemsize
    # Double-buffered working set -> explicit scoped-VMEM budget (raises v5e's
    # 16 MiB default; stays far below v7x's 64 MiB physical VMEM).
    working = (
        (2 * tm * tk + w_bufs * tk * tn + 2 * tm * tn + 2 * tn) * itemsize
        + tm * tn * 4  # f32 accumulator scratch
    )
    vmem_limit = max(32 * 1024 * 1024, int(working * 1.25))

    # Scheduler hint: include tiling re-fetch (x streamed once per N pass,
    # W once per M pass).
    cost = pl.CostEstimate(
        flops=2 * M * K * out_dim,
        transcendentals=0,
        bytes_accessed=(
            Mp * Kp * n_blocks + Kp * Np * m_blocks + Np * m_blocks + Mp * Np
        )
        * itemsize,
    )

    y = pl.pallas_call(
        _dense_kernel,
        out_shape=jax.ShapeDtypeStruct((Mp, Np), x.dtype),
        grid_spec=pltpu.PrefetchScalarGridSpec(
            num_scalar_prefetch=0,
            grid=grid,
            in_specs=[
                pl.BlockSpec((tm, tk), lambda j, i, k: (i, k)),   # x tile
                w_spec,                                           # W^T tile (tk, tn)
                pl.BlockSpec((1, tn), lambda j, i, k: (0, j)),    # bias per-N tile
            ],
            out_specs=pl.BlockSpec((tm, tn), lambda j, i, k: (i, j)),
            scratch_shapes=[pltpu.VMEM((tm, tn), jnp.float32)],
        ),
        compiler_params=pltpu.CompilerParams(
            dimension_semantics=("parallel", "parallel", "arbitrary"),
            vmem_limit_bytes=vmem_limit,
        ),
        cost_estimate=cost,
    )(x_p, w_t, b2d)

    y = y[:M, :out_dim]
    # PyTorch: self.dense(x)[..., None, None]
    return y[..., None, None]


def init_dense_params(key, input_dim, output_dim, dtype=jnp.float32):
    """Deterministic init mimicking nn.Linear default (uniform +/- 1/sqrt(in))."""
    k_w, k_b = jax.random.split(key)
    bound = 1.0 / jnp.sqrt(jnp.array(input_dim, dtype=jnp.float32))
    weight = jax.random.uniform(
        k_w, (output_dim, input_dim), dtype=dtype, minval=-bound, maxval=bound
    )
    bias = jax.random.uniform(
        k_b, (output_dim,), dtype=dtype, minval=-bound, maxval=bound
    )
    return weight, bias


if __name__ == "__main__":
    key = jax.random.PRNGKey(0)
    k_x, k_p = jax.random.split(key)

    batch = 2
    input_dim = 32
    output_dim = 64

    x = jax.random.normal(k_x, (batch, input_dim), dtype=jnp.float32)
    weight, bias = init_dense_params(k_p, input_dim, output_dim)

    # One-time layout prep (transpose + pad) outside the per-step hot path.
    w_t, b2d = prepare_dense_params(weight, bias)

    y = dense_forward(x, w_t, b2d, out_dim=output_dim)
    jax.block_until_ready(y)

    # Reference check against plain JAX (strict f32 path -> tight tolerance).
    y_ref = (x @ weight.T + bias)[..., None, None]
    assert y.shape == (batch, output_dim, 1, 1), y.shape
    assert jnp.allclose(y, y_ref, atol=1e-5, rtol=1e-5)

    print("KERNEL_OK")
</pallas_src>

<mosaic_0001>
module attributes {stable_mosaic.version = 11 : i64} {
  func.func @_dense_kernel(%arg0: i32, %arg1: i32, %arg2: i32, %arg3: memref<8x128xf32, #tpu.memory_space<vmem>>, %arg4: memref<128x128xf32, #tpu.memory_space<vmem>>, %arg5: memref<1x128xf32, #tpu.memory_space<vmem>>, %arg6: memref<8x128xf32, #tpu.memory_space<vmem>>, %arg7: memref<8x128xf32, #tpu.memory_space<vmem>>) attributes {dimension_semantics = [#tpu.dimension_semantics<parallel>, #tpu.dimension_semantics<parallel>, #tpu.dimension_semantics<arbitrary>], iteration_bounds = array<i64: 1, 1, 1>, scalar_prefetch = 0 : i64, scratch_operands = 1 : i64, tpu.core_type = #tpu.core_type<tc>, window_params = [{transform_indices = @transform_0, window_bounds = array<i64: 8, 128>}, {transform_indices = @transform_1, window_bounds = array<i64: 128, 128>}, {transform_indices = @transform_2, window_bounds = array<i64: 1, 128>}, {transform_indices = @transform_3, window_bounds = array<i64: 8, 128>}]} {
    %c0_i32 = arith.constant 0 : i32
    %0 = arith.cmpi eq, %arg2, %c0_i32 : i32
    %1 = arith.extui %0 : i1 to i32
    %c0_i32_0 = arith.constant 0 : i32
    %2 = arith.cmpi ne, %1, %c0_i32_0 : i32
    scf.if %2 {
      %cst_10 = arith.constant 0.000000e+00 : f32
      %12 = vector.broadcast %cst_10 : f32 to vector<8x128xf32>
      %c0_11 = arith.constant 0 : index
      %c0_12 = arith.constant 0 : index
      %13 = vector.load %arg7[%c0_11, %c0_12] : memref<8x128xf32, #tpu.memory_space<vmem>>, vector<8x128xf32>
      tpu.vector_store %arg7[%c0_11, %c0_12], %12 {strides = array<i32>} : memref<8x128xf32, #tpu.memory_space<vmem>>, vector<8x128xf32>,
    } else {
    }
    %c0 = arith.constant 0 : index
    %c0_1 = arith.constant 0 : index
    %3 = vector.load %arg7[%c0, %c0_1] : memref<8x128xf32, #tpu.memory_space<vmem>>, vector<8x128xf32>
    %c0_2 = arith.constant 0 : index
    %c0_3 = arith.constant 0 : index
    %4 = vector.load %arg3[%c0_2, %c0_3] : memref<8x128xf32, #tpu.memory_space<vmem>>, vector<8x128xf32>
    %c0_4 = arith.constant 0 : index
    %c0_5 = arith.constant 0 : index
    %5 = vector.load %arg4[%c0_4, %c0_5] : memref<128x128xf32, #tpu.memory_space<vmem>>, vector<128x128xf32>
    %cst = arith.constant dense<0.000000e+00> : vector<8x128xf32>
    %6 = tpu.matmul %4, %5, %cst {dimension_numbers = #tpu.dot_dimension_numbers<[1], [0], [0], [1], [0, 0, 1, 1], [], []>} : vector<8x128xf32>, vector<128x128xf32>, vector<8x128xf32> -> vector<8x128xf32>
    %7 = arith.addf %3, %6 : vector<8x128xf32>
    %c0_6 = arith.constant 0 : index
    %c0_7 = arith.constant 0 : index
    %8 = vector.load %arg7[%c0_6, %c0_7] : memref<8x128xf32, #tpu.memory_space<vmem>>, vector<8x128xf32>
    tpu.vector_store %arg7[%c0_6, %c0_7], %7 {strides = array<i32>} : memref<8x128xf32, #tpu.memory_space<vmem>>, vector<8x128xf32>,
    %c0_i32_8 = arith.constant 0 : i32
    %9 = arith.cmpi eq, %arg2, %c0_i32_8 : i32
    %10 = arith.extui %9 : i1 to i32
    %c0_i32_9 = arith.constant 0 : i32
    %11 = arith.cmpi ne, %10, %c0_i32_9 : i32
    scf.if %11 {
      %c0_10 = arith.constant 0 : index
      %c0_11 = arith.constant 0 : index
      %12 = vector.load %arg7[%c0_10, %c0_11] : memref<8x128xf32, #tpu.memory_space<vmem>>, vector<8x128xf32>
      %c0_12 = arith.constant 0 : index
      %c0_13 = arith.constant 0 : index
      %13 = vector.load %arg5[%c0_12, %c0_13] : memref<1x128xf32, #tpu.memory_space<vmem>>, vector<1x128xf32>
      %14 = vector.broadcast %13 : vector<1x128xf32> to vector<8x128xf32>
      %15 = arith.addf %12, %14 : vector<8x128xf32>
      %c0_14 = arith.constant 0 : index
      %c0_15 = arith.constant 0 : index
      %16 = vector.load %arg6[%c0_14, %c0_15] : memref<8x128xf32, #tpu.memory_space<vmem>>, vector<8x128xf32>
      tpu.vector_store %arg6[%c0_14, %c0_15], %15 {strides = array<i32>} : memref<8x128xf32, #tpu.memory_space<vmem>>, vector<8x128xf32>,
    } else {
    }
    return
  }
  func.func @transform_0(%arg0: i32, %arg1: i32, %arg2: i32) -> (i32, i32) {
    %c0_i32 = arith.constant 0 : i32
    return %arg1, %arg2 : i32, i32
  }
  func.func @transform_1(%arg0: i32, %arg1: i32, %arg2: i32) -> (i32, i32) {
    %c0_i32 = arith.constant 0 : i32
    return %arg2, %arg0 : i32, i32
  }
  func.func @transform_2(%arg0: i32, %arg1: i32, %arg2: i32) -> (i32, i32) {
    %c0_i32 = arith.constant 0 : i32
    %c0_i32_0 = arith.constant 0 : i32
    return %c0_i32, %arg0 : i32, i32
  }
  func.func @transform_3(%arg0: i32, %arg1: i32, %arg2: i32) -> (i32, i32) {
    %c0_i32 = arith.constant 0 : i32
    return %arg1, %arg0 : i32, i32
  }
}

</mosaic_0001>

<bundles_post_ra>
// kernel: dense_forward.1
= control target key start
LH: loop header
LB: loop body
LE: loop exit
PB: predicated region body
PF: predicated region fallthrough
CT: control target
= control target key end

     0   :  { %8 = vsyncpa [#allocation4], 0  ;;  %s120_s15 = smov [#allocation3]   ;;  %s121_s17 = smov 128   ;;  %s155_s0 = inlined_call_operand.vmem [shape: f32[8,128], index: 0, kind: input, shape index: {}]   ;;  %s156_s1 = inlined_call_operand.hbm [shape: f32[128,128], index: 1, kind: input, shape index: {}]   ;;  %s157_s2 = inlined_call_operand.vmem [shape: f32[1,128], index: 2, kind: input, shape index: {}]   ;;  %s158_s3 = inlined_call_operand.vmem [shape: f32[8,128], index: 3, kind: output, shape index: {}]  }
   0x1   :  { %s15_s14 = sshll.u32 %s156_s1, 4  ;;  %s17_s16 = sshll.u32 %s120_s15, 4  ;;  %s16_s14 = int_to_ptr.hbm [resolvable:$true] %s15_s14  ;;  %s18_s16 = int_to_ptr.vmem [resolvable:$true] %s17_s16 }
   0x2   :  { %s122_s18 = smov 8  }
   0x3   :  { %23 = dma.hbm_to_vmem [thread:$0]  %s16_s14, 2048, %s18_s16, [#allocation4], %s121_s17, %s121_s17, %s122_s18  }
   0x4   :  { %118 = dma.done.wait [#allocation4], 2048  }
   0x5   :  { %119 = vsyncadd [#allocation4], 4294965248  ;;  %v52_v0 = vld [vmem:[#allocation3 + $0x78] sm:$0xff]  ;;  %v51_v1 = vld [vmem:[#allocation3 + $0x70] sm:$0xff] }
   0x6   :  { %53 = vmatpush.msra.mxu0 %v52_v0  ;;  %v50_v2 = vld [vmem:[#allocation3 + $0x68] sm:$0xff]  ;;  %v49_v3 = vld [vmem:[#allocation3 + $0x60] sm:$0xff]  ;;  %v48_v4 = vld [vmem:[#allocation3 + $0x58] sm:$0xff] }
   0x7   :  { %v47_v5 = vld [vmem:[#allocation3 + $0x50] sm:$0xff]  ;;  %v46_v6 = vld [vmem:[#allocation3 + $0x48] sm:$0xff]  ;;  %v45_v7 = vld [vmem:[#allocation3 + $0x40] sm:$0xff] }
   0x8   :  { %54 = vmatpush.msra.mxu0 %v51_v1  ;;  %v44_v8 = vld [vmem:[#allocation3 + $0x38] sm:$0xff]  ;;  %v43_v9 = vld [vmem:[#allocation3 + $0x30] sm:$0xff]  ;;  %v42_v10 = vld [vmem:[#allocation3 + $0x28] sm:$0xff] }
   0x9   :  { %v41_v11 = vld [vmem:[#allocation3 + $0x20] sm:$0xff]  ;;  %v40_v12 = vld [vmem:[#allocation3 + $0x18] sm:$0xff]  ;;  %v39_v13 = vld [vmem:[#allocation3 + $0x10] sm:$0xff] }
   0xa   :  { %55 = vmatpush.msra.mxu0 %v50_v2  ;;  %v38_v14 = vld [vmem:[#allocation3 + $0x8] sm:$0xff]  ;;  %v37_v15 = vld [vmem:[#allocation3] sm:$0xff] }
   0xb   :  { %v36_v16 = vld [vmem:[%s155_s0] sm:$0xff] }
   0xc   :  { %56 = vmatpush.msra.mxu0 %v49_v3  ;;  %v93_v17 = vld [vmem:[%s157_s2] ss:$0 sm:$0xff] }
   0xe   :  { %57 = vmatpush.msra.mxu0 %v48_v4 }
  0x10   :  { %58 = vmatpush.msra.mxu0 %v47_v5 }
  0x12   :  { %59 = vmatpush.msra.mxu0 %v46_v6 }
  0x14   :  { %60 = vmatpush.msra.mxu0 %v45_v7 }
  0x16   :  { %61 = vmatpush.msra.mxu0 %v44_v8 }
  0x18   :  { %62 = vmatpush.msra.mxu0 %v43_v9 }
  0x1a   :  { %63 = vmatpush.msra.mxu0 %v42_v10 }
  0x1c   :  { %64 = vmatpush.msra.mxu0 %v41_v11 }
  0x1e   :  { %65 = vmatpush.msra.mxu0 %v40_v12 }
  0x20   :  { %66 = vmatpush.msra.mxu0 %v39_v13 }
  0x22   :  { %67 = vmatpush.msra.mxu0 %v38_v14 }
  0x24   :  { %68 = vmatpush.msra.mxu0 %v37_v15 }
  0x25   :  { %69 = vmatmul.f32.vlgmr.msra.gmra.mxu0 %v36_v16 }
  0xa2   :  { %v70_v18 = vpop.f32.mrf.mxu0 }
  0xa3   :  { %v83_v19 = vadd.f32 %v93_v17, %v70_v18 }
  0xa5   :  { %84 = vst [vmem:[%s158_s3] sm:$0xff] %v83_v19 }
  0xa6   :  { %89 = vsyncpa [#allocation4], 1 }

</bundles_post_ra>
